<compile_context>
chip_gen: v7x
topology: tpu7x:2x2x1
jax: 0.10.0
libtpu: 0.0.40
codegen_flags: <defaults>
</compile_context>

<pallas_src>
import functools

import jax
import jax.numpy as jnp
from jax.experimental import pallas as pl
from jax.experimental.pallas import tpu as pltpu


# ---------------------------------------------------------------------------
# Fused Pallas kernel: Legendre graph conv (all heads) + final linear
# ---------------------------------------------------------------------------

def _mh_legendre_kernel(adj_ref, drow_ref, dcol_ref, x_ref,
                        wh_ref, bh_ref, wf_ref, bf_ref, o_ref, *, K, F):
    adj = adj_ref[0]                      # (N, N) f32
    N = adj.shape[0]

    # A_hat = adj + I
    row = jax.lax.broadcasted_iota(jnp.int32, (N, N), 0)
    col = jax.lax.broadcasted_iota(jnp.int32, (N, N), 1)
    a_hat = adj + (row == col).astype(adj.dtype)

    # L = D^-1/2 A_hat D^-1/2  (elementwise with row / col broadcasts of d)
    L = a_hat * drow_ref[0] * dcol_ref[0]          # (N, N)

    x = x_ref[0]                                   # (N, F)
    wh = wh_ref[...]                               # ((K+1)*F, out)  stacked heads

    def tap(p_k, k):
        # (P_k @ x) @ W_heads[k]  ==  k-th block of the concatenated features
        feats = jnp.dot(p_k, x, preferred_element_type=jnp.float32)       # (N, F)
        return jnp.dot(feats, wh[k * F:(k + 1) * F, :],
                       preferred_element_type=jnp.float32)                # (N, out)

    # Legendre recurrence, accumulated directly into the head-linear output.
    p_prev = jnp.ones_like(L)                      # P0
    h1 = tap(p_prev, 0)
    if K >= 1:
        p_cur = L                                  # P1
        h1 = h1 + tap(p_cur, 1)
        for k in range(2, K + 1):
            p_next = ((2.0 * k - 1.0) * L * p_cur - (k - 1.0) * p_prev) / float(k)
            h1 = h1 + tap(p_next, k)
            p_prev, p_cur = p_cur, p_next

    h1 = h1 + bh_ref[...]                          # (N, out) + (1, out)

    # Final Linear(out_features, out_features), fused.
    out = jnp.dot(h1, wf_ref[...], preferred_element_type=jnp.float32) + bf_ref[...]
    o_ref[0] = out.astype(o_ref.dtype)


# ---------------------------------------------------------------------------
# Wrapper
# ---------------------------------------------------------------------------

def multi_head_legendre_gcn(x, adj, wh, bh, wf, bf, *, K):
    """x: (B,N,F) f32, adj: (B,N,N) f32.
    wh: ((K+1)*F, out) stacked head weights (transposed+concatenated),
    bh: (1, out) concatenated head biases,
    wf: (out, out) final weight transposed, bf: (1, out)."""
    B, N, F = x.shape
    out_f = wh.shape[1]

    # Tiny glue: symmetric-normalization degrees (row sums of A_hat).
    d = jax.lax.rsqrt(jnp.sum(adj, axis=-1) + 1.0)     # (B, N)
    d_row = d[:, :, None]                              # (B, N, 1)
    d_col = d[:, None, :]                              # (B, 1, N)

    flops = B * ((K + 1) * (2 * N * N * F + 2 * N * F * out_f)
                 + 2 * N * out_f * out_f)
    bytes_accessed = 4 * (adj.size + x.size + d.size * 2 + wh.size + bh.size
                          + wf.size + bf.size + B * N * out_f)

    kernel = functools.partial(_mh_legendre_kernel, K=K, F=F)
    return pl.pallas_call(
        kernel,
        out_shape=jax.ShapeDtypeStruct((B, N, out_f), x.dtype),
        grid=(B,),
        in_specs=[
            pl.BlockSpec((1, N, N), lambda b: (b, 0, 0)),       # adj
            pl.BlockSpec((1, N, 1), lambda b: (b, 0, 0)),       # d (row layout)
            pl.BlockSpec((1, 1, N), lambda b: (b, 0, 0)),       # d (col layout)
            pl.BlockSpec((1, N, F), lambda b: (b, 0, 0)),       # x
            pl.BlockSpec((wh.shape[0], out_f), lambda b: (0, 0)),  # stacked head W
            pl.BlockSpec((1, out_f), lambda b: (0, 0)),            # stacked head b
            pl.BlockSpec((out_f, out_f), lambda b: (0, 0)),        # final W^T
            pl.BlockSpec((1, out_f), lambda b: (0, 0)),            # final b
        ],
        out_specs=pl.BlockSpec((1, N, out_f), lambda b: (b, 0, 0)),
        compiler_params=pltpu.CompilerParams(
            dimension_semantics=("parallel",)),
        cost_estimate=pl.CostEstimate(
            flops=flops, transcendentals=0, bytes_accessed=bytes_accessed),
    )(adj, d_row, d_col, x, wh, bh, wf, bf)


# ---------------------------------------------------------------------------
# Parameters (deterministic random init, same structure as the torch module)
# ---------------------------------------------------------------------------

def make_params(key, in_features, out_features, K, heads):
    assert out_features % heads == 0
    fph = out_features // heads
    kf = in_features * (K + 1)
    keys = jax.random.split(key, 2 * heads + 2)
    head_w = [0.01 * jax.random.normal(keys[2 * h], (fph, kf), jnp.float32)
              for h in range(heads)]
    head_b = [0.01 * jax.random.normal(keys[2 * h + 1], (fph,), jnp.float32)
              for h in range(heads)]
    final_w = 0.01 * jax.random.normal(keys[-2], (out_features, out_features),
                                       jnp.float32)
    final_b = 0.01 * jax.random.normal(keys[-1], (out_features,), jnp.float32)
    return dict(head_w=head_w, head_b=head_b,
                final_w=final_w, final_b=final_b)


def fold_params(params):
    """Stack per-head linears into one matrix; transpose final weight.
    Done ONCE outside the jitted forward (perf feedback)."""
    wh = jnp.concatenate([w.T for w in params["head_w"]], axis=1)  # (kf, out)
    bh = jnp.concatenate(params["head_b"]).reshape(1, -1)          # (1, out)
    wf = params["final_w"].T                                       # (out, out)
    bf = params["final_b"].reshape(1, -1)                          # (1, out)
    return wh, bh, wf, bf


# ---------------------------------------------------------------------------
# Pure-JAX reference (mirrors the torch forward exactly)
# ---------------------------------------------------------------------------

def reference_forward(x, adj, params, *, K):
    B, N, _ = adj.shape
    a_hat = adj + jnp.eye(N, dtype=adj.dtype)[None]
    d = jnp.sum(a_hat, axis=2) ** -0.5
    D = jax.vmap(jnp.diag)(d)
    L = D @ a_hat @ D
    P = [jnp.ones_like(L), L]
    for k in range(2, K + 1):
        P.append(((2 * k - 1) * L * P[-1] - (k - 1) * P[-2]) / k)
    h = jnp.concatenate([P[k] @ x for k in range(K + 1)], axis=2)
    outs = []
    for W, b in zip(params["head_w"], params["head_b"]):
        outs.append(jnp.einsum("bnf,of->bno", h, W) + b)
    out = jnp.concatenate(outs, axis=-1)
    return jnp.einsum("bno,po->bnp", out, params["final_w"]) + params["final_b"]


# ---------------------------------------------------------------------------

if __name__ == "__main__":
    key = jax.random.PRNGKey(0)
    pkey, akey, xkey = jax.random.split(key, 3)

    # Small shapes consistent with the module.
    B, N = 2, 16
    in_features, out_features, K, heads = 32, 64, 3, 4

    params = make_params(pkey, in_features, out_features, K, heads)
    wh, bh, wf, bf = fold_params(params)

    # Symmetric 0/1 adjacency without self-loops.
    a = jax.random.uniform(akey, (B, N, N), jnp.float32)
    adj = ((a + jnp.swapaxes(a, 1, 2)) > 1.0).astype(jnp.float32)
    adj = adj * (1.0 - jnp.eye(N, dtype=jnp.float32))

    x = jax.random.normal(xkey, (B, N, in_features), jnp.float32)

    fwd = jax.jit(functools.partial(multi_head_legendre_gcn, K=K))
    out = fwd(x, adj, wh, bh, wf, bf)
    out = jax.block_until_ready(out)

    assert out.shape == (B, N, out_features), out.shape
    assert bool(jnp.all(jnp.isfinite(out)))

    ref = reference_forward(x, adj, params, K=K)
    assert bool(jnp.allclose(out, ref, atol=1e-3, rtol=1e-2)), (
        float(jnp.max(jnp.abs(out - ref))))

    print("KERNEL_OK")
</pallas_src>

<mosaic_0001>
module attributes {stable_mosaic.version = 11 : i64} {
  func.func @_mh_legendre_kernel(%arg0: i32, %arg1: memref<1x16x16xf32, #tpu.memory_space<vmem>>, %arg2: memref<1x16x1xf32, #tpu.memory_space<vmem>>, %arg3: memref<1x1x16xf32, #tpu.memory_space<vmem>>, %arg4: memref<1x16x32xf32, #tpu.memory_space<vmem>>, %arg5: memref<128x64xf32, #tpu.memory_space<vmem>>, %arg6: memref<1x64xf32, #tpu.memory_space<vmem>>, %arg7: memref<64x64xf32, #tpu.memory_space<vmem>>, %arg8: memref<1x64xf32, #tpu.memory_space<vmem>>, %arg9: memref<1x16x64xf32, #tpu.memory_space<vmem>>) attributes {dimension_semantics = [#tpu.dimension_semantics<parallel>], iteration_bounds = array<i64: 2>, scalar_prefetch = 0 : i64, scratch_operands = 0 : i64, tpu.core_type = #tpu.core_type<tc>, window_params = [{transform_indices = @transform_0, window_bounds = array<i64: 1, 16, 16>}, {transform_indices = @transform_1, window_bounds = array<i64: 1, 16, 1>}, {transform_indices = @transform_2, window_bounds = array<i64: 1, 1, 16>}, {transform_indices = @transform_3, window_bounds = array<i64: 1, 16, 32>}, {pipeline_mode = #tpu.pipeline_mode<synchronous>, transform_indices = @transform_4, window_bounds = array<i64: 128, 64>}, {pipeline_mode = #tpu.pipeline_mode<synchronous>, transform_indices = @transform_5, window_bounds = array<i64: 1, 64>}, {pipeline_mode = #tpu.pipeline_mode<synchronous>, transform_indices = @transform_6, window_bounds = array<i64: 64, 64>}, {pipeline_mode = #tpu.pipeline_mode<synchronous>, transform_indices = @transform_7, window_bounds = array<i64: 1, 64>}, {transform_indices = @transform_8, window_bounds = array<i64: 1, 16, 64>}]} {
    %c0 = arith.constant 0 : index
    %c0_0 = arith.constant 0 : index
    %c0_1 = arith.constant 0 : index
    %0 = vector.load %arg1[%c0, %c0_0, %c0_1] : memref<1x16x16xf32, #tpu.memory_space<vmem>>, vector<1x16x16xf32>
    %1 = vector.shape_cast %0 : vector<1x16x16xf32> to vector<16x16xf32>
    %2 = tpu.iota {dimensions = array<i32: 0>} : vector<16x16xi32>
    %3 = tpu.iota {dimensions = array<i32: 1>} : vector<16x16xi32>
    %4 = arith.cmpi eq, %2, %3 : vector<16x16xi32>
    %5 = arith.extui %4 : vector<16x16xi1> to vector<16x16xi32>
    %6 = arith.sitofp %5 : vector<16x16xi32> to vector<16x16xf32>
    %7 = arith.addf %1, %6 : vector<16x16xf32>
    %c0_2 = arith.constant 0 : index
    %c0_3 = arith.constant 0 : index
    %c0_4 = arith.constant 0 : index
    %8 = vector.load %arg2[%c0_2, %c0_3, %c0_4] : memref<1x16x1xf32, #tpu.memory_space<vmem>>, vector<1x16x1xf32>
    %9 = vector.shape_cast %8 : vector<1x16x1xf32> to vector<16x1xf32>
    %10 = vector.broadcast %9 : vector<16x1xf32> to vector<16x16xf32>
    %11 = arith.mulf %7, %10 : vector<16x16xf32>
    %c0_5 = arith.constant 0 : index
    %c0_6 = arith.constant 0 : index
    %c0_7 = arith.constant 0 : index
    %12 = vector.load %arg3[%c0_5, %c0_6, %c0_7] : memref<1x1x16xf32, #tpu.memory_space<vmem>>, vector<1x1x16xf32>
    %13 = vector.shape_cast %12 : vector<1x1x16xf32> to vector<1x16xf32>
    %14 = vector.broadcast %13 : vector<1x16xf32> to vector<16x16xf32>
    %15 = arith.mulf %11, %14 : vector<16x16xf32>
    %c0_8 = arith.constant 0 : index
    %c0_9 = arith.constant 0 : index
    %c0_10 = arith.constant 0 : index
    %16 = vector.load %arg4[%c0_8, %c0_9, %c0_10] : memref<1x16x32xf32, #tpu.memory_space<vmem>>, vector<1x16x32xf32>
    %17 = vector.shape_cast %16 : vector<1x16x32xf32> to vector<16x32xf32>
    %c0_11 = arith.constant 0 : index
    %c0_12 = arith.constant 0 : index
    %18 = vector.load %arg5[%c0_11, %c0_12] : memref<128x64xf32, #tpu.memory_space<vmem>>, vector<128x64xf32>
    %cst = arith.constant 1.000000e+00 : f32
    %19 = vector.broadcast %cst : f32 to vector<16x16xf32>
    %cst_13 = arith.constant dense<0.000000e+00> : vector<16x32xf32>
    %20 = tpu.matmul %19, %17, %cst_13 {dimension_numbers = #tpu.dot_dimension_numbers<[1], [0], [0], [1], [0, 0, 1, 1], [], []>} : vector<16x16xf32>, vector<16x32xf32>, vector<16x32xf32> -> vector<16x32xf32>
    %21 = vector.extract_strided_slice %18 {offsets = [0, 0], sizes = [32, 64], strides = [1, 1]} : vector<128x64xf32> to vector<32x64xf32>
    %cst_14 = arith.constant dense<0.000000e+00> : vector<16x64xf32>
    %22 = tpu.matmul %20, %21, %cst_14 {dimension_numbers = #tpu.dot_dimension_numbers<[1], [0], [0], [1], [0, 0, 1, 1], [], []>} : vector<16x32xf32>, vector<32x64xf32>, vector<16x64xf32> -> vector<16x64xf32>
    %cst_15 = arith.constant dense<0.000000e+00> : vector<16x32xf32>
    %23 = tpu.matmul %15, %17, %cst_15 {dimension_numbers = #tpu.dot_dimension_numbers<[1], [0], [0], [1], [0, 0, 1, 1], [], []>} : vector<16x16xf32>, vector<16x32xf32>, vector<16x32xf32> -> vector<16x32xf32>
    %24 = vector.extract_strided_slice %18 {offsets = [32, 0], sizes = [32, 64], strides = [1, 1]} : vector<128x64xf32> to vector<32x64xf32>
    %cst_16 = arith.constant dense<0.000000e+00> : vector<16x64xf32>
    %25 = tpu.matmul %23, %24, %cst_16 {dimension_numbers = #tpu.dot_dimension_numbers<[1], [0], [0], [1], [0, 0, 1, 1], [], []>} : vector<16x32xf32>, vector<32x64xf32>, vector<16x64xf32> -> vector<16x64xf32>
    %26 = arith.addf %22, %25 : vector<16x64xf32>
    %cst_17 = arith.constant 3.000000e+00 : f32
    %27 = vector.broadcast %cst_17 : f32 to vector<16x16xf32>
    %28 = arith.mulf %27, %15 : vector<16x16xf32>
    %29 = arith.mulf %28, %15 : vector<16x16xf32>
    %cst_18 = arith.constant 1.000000e+00 : f32
    %30 = vector.broadcast %cst_18 : f32 to vector<16x16xf32>
    %31 = arith.mulf %30, %19 : vector<16x16xf32>
    %32 = arith.subf %29, %31 : vector<16x16xf32>
    %cst_19 = arith.constant 2.000000e+00 : f32
    %33 = vector.broadcast %cst_19 : f32 to vector<16x16xf32>
    %34 = arith.divf %32, %33 : vector<16x16xf32>
    %cst_20 = arith.constant dense<0.000000e+00> : vector<16x32xf32>
    %35 = tpu.matmul %34, %17, %cst_20 {dimension_numbers = #tpu.dot_dimension_numbers<[1], [0], [0], [1], [0, 0, 1, 1], [], []>} : vector<16x16xf32>, vector<16x32xf32>, vector<16x32xf32> -> vector<16x32xf32>
    %36 = vector.extract_strided_slice %18 {offsets = [64, 0], sizes = [32, 64], strides = [1, 1]} : vector<128x64xf32> to vector<32x64xf32>
    %cst_21 = arith.constant dense<0.000000e+00> : vector<16x64xf32>
    %37 = tpu.matmul %35, %36, %cst_21 {dimension_numbers = #tpu.dot_dimension_numbers<[1], [0], [0], [1], [0, 0, 1, 1], [], []>} : vector<16x32xf32>, vector<32x64xf32>, vector<16x64xf32> -> vector<16x64xf32>
    %38 = arith.addf %26, %37 : vector<16x64xf32>
    %cst_22 = arith.constant 5.000000e+00 : f32
    %39 = vector.broadcast %cst_22 : f32 to vector<16x16xf32>
    %40 = arith.mulf %39, %15 : vector<16x16xf32>
    %41 = arith.mulf %40, %34 : vector<16x16xf32>
    %cst_23 = arith.constant 2.000000e+00 : f32
    %42 = vector.broadcast %cst_23 : f32 to vector<16x16xf32>
    %43 = arith.mulf %42, %15 : vector<16x16xf32>
    %44 = arith.subf %41, %43 : vector<16x16xf32>
    %cst_24 = arith.constant 3.000000e+00 : f32
    %45 = vector.broadcast %cst_24 : f32 to vector<16x16xf32>
    %46 = arith.divf %44, %45 : vector<16x16xf32>
    %cst_25 = arith.constant dense<0.000000e+00> : vector<16x32xf32>
    %47 = tpu.matmul %46, %17, %cst_25 {dimension_numbers = #tpu.dot_dimension_numbers<[1], [0], [0], [1], [0, 0, 1, 1], [], []>} : vector<16x16xf32>, vector<16x32xf32>, vector<16x32xf32> -> vector<16x32xf32>
    %48 = vector.extract_strided_slice %18 {offsets = [96, 0], sizes = [32, 64], strides = [1, 1]} : vector<128x64xf32> to vector<32x64xf32>
    %cst_26 = arith.constant dense<0.000000e+00> : vector<16x64xf32>
    %49 = tpu.matmul %47, %48, %cst_26 {dimension_numbers = #tpu.dot_dimension_numbers<[1], [0], [0], [1], [0, 0, 1, 1], [], []>} : vector<16x32xf32>, vector<32x64xf32>, vector<16x64xf32> -> vector<16x64xf32>
    %50 = arith.addf %38, %49 : vector<16x64xf32>
    %c0_27 = arith.constant 0 : index
    %c0_28 = arith.constant 0 : index
    %51 = vector.load %arg6[%c0_27, %c0_28] : memref<1x64xf32, #tpu.memory_space<vmem>>, vector<1x64xf32>
    %52 = vector.broadcast %51 : vector<1x64xf32> to vector<16x64xf32>
    %53 = arith.addf %50, %52 : vector<16x64xf32>
    %c0_29 = arith.constant 0 : index
    %c0_30 = arith.constant 0 : index
    %54 = vector.load %arg7[%c0_29, %c0_30] : memref<64x64xf32, #tpu.memory_space<vmem>>, vector<64x64xf32>
    %cst_31 = arith.constant dense<0.000000e+00> : vector<16x64xf32>
    %55 = tpu.matmul %53, %54, %cst_31 {dimension_numbers = #tpu.dot_dimension_numbers<[1], [0], [0], [1], [0, 0, 1, 1], [], []>} : vector<16x64xf32>, vector<64x64xf32>, vector<16x64xf32> -> vector<16x64xf32>
    %c0_32 = arith.constant 0 : index
    %c0_33 = arith.constant 0 : index
    %56 = vector.load %arg8[%c0_32, %c0_33] : memref<1x64xf32, #tpu.memory_space<vmem>>, vector<1x64xf32>
    %57 = vector.broadcast %56 : vector<1x64xf32> to vector<16x64xf32>
    %58 = arith.addf %55, %57 : vector<16x64xf32>
    %c0_34 = arith.constant 0 : index
    %c0_35 = arith.constant 0 : index
    %c0_36 = arith.constant 0 : index
    %59 = vector.load %arg9[%c0_34, %c0_35, %c0_36] : memref<1x16x64xf32, #tpu.memory_space<vmem>>, vector<1x16x64xf32>
    %60 = vector.shape_cast %59 : vector<1x16x64xf32> to vector<16x64xf32>
    %61 = vector.shape_cast %58 : vector<16x64xf32> to vector<1x16x64xf32>
    tpu.vector_store %arg9[%c0_34, %c0_35, %c0_36], %61 {strides = array<i32>} : memref<1x16x64xf32, #tpu.memory_space<vmem>>, vector<1x16x64xf32>,
    return
  }
  func.func @transform_0(%arg0: i32) -> (i32, i32, i32) {
    %c0_i32 = arith.constant 0 : i32
    %c0_i32_0 = arith.constant 0 : i32
    %c0_i32_1 = arith.constant 0 : i32
    return %arg0, %c0_i32, %c0_i32_0 : i32, i32, i32
  }
  func.func @transform_1(%arg0: i32) -> (i32, i32, i32) {
    %c0_i32 = arith.constant 0 : i32
    %c0_i32_0 = arith.constant 0 : i32
    %c0_i32_1 = arith.constant 0 : i32
    return %arg0, %c0_i32, %c0_i32_0 : i32, i32, i32
  }
  func.func @transform_2(%arg0: i32) -> (i32, i32, i32) {
    %c0_i32 = arith.constant 0 : i32
    %c0_i32_0 = arith.constant 0 : i32
    %c0_i32_1 = arith.constant 0 : i32
    return %arg0, %c0_i32, %c0_i32_0 : i32, i32, i32
  }
  func.func @transform_3(%arg0: i32) -> (i32, i32, i32) {
    %c0_i32 = arith.constant 0 : i32
    %c0_i32_0 = arith.constant 0 : i32
    %c0_i32_1 = arith.constant 0 : i32
    return %arg0, %c0_i32, %c0_i32_0 : i32, i32, i32
  }
  func.func @transform_4(%arg0: i32) -> (i32, i32) {
    %c0_i32 = arith.constant 0 : i32
    %c0_i32_0 = arith.constant 0 : i32
    %c0_i32_1 = arith.constant 0 : i32
    return %c0_i32, %c0_i32_0 : i32, i32
  }
  func.func @transform_5(%arg0: i32) -> (i32, i32) {
    %c0_i32 = arith.constant 0 : i32
    %c0_i32_0 = arith.constant 0 : i32
    %c0_i32_1 = arith.constant 0 : i32
    return %c0_i32, %c0_i32_0 : i32, i32
  }
  func.func @transform_6(%arg0: i32) -> (i32, i32) {
    %c0_i32 = arith.constant 0 : i32
    %c0_i32_0 = arith.constant 0 : i32
    %c0_i32_1 = arith.constant 0 : i32
    return %c0_i32, %c0_i32_0 : i32, i32
  }
  func.func @transform_7(%arg0: i32) -> (i32, i32) {
    %c0_i32 = arith.constant 0 : i32
    %c0_i32_0 = arith.constant 0 : i32
    %c0_i32_1 = arith.constant 0 : i32
    return %c0_i32, %c0_i32_0 : i32, i32
  }
  func.func @transform_8(%arg0: i32) -> (i32, i32, i32) {
    %c0_i32 = arith.constant 0 : i32
    %c0_i32_0 = arith.constant 0 : i32
    %c0_i32_1 = arith.constant 0 : i32
    return %arg0, %c0_i32, %c0_i32_0 : i32, i32, i32
  }
}

</mosaic_0001>

<bundles_post_ra>
// kernel: multi_head_legendre_gcn.1
= control target key start
LH: loop header
LB: loop body
LE: loop exit
PB: predicated region body
PF: predicated region fallthrough
CT: control target
= control target key end

     0   :  { %13 = vsyncpa [#allocation3], 0  ;;  %s1947_s0 = inlined_call_operand.vmem [shape: f32[2,16,16], index: 0, kind: input, shape index: {}]   ;;  %s1948_s1 = inlined_call_operand.vmem [shape: f32[2,16,1], index: 1, kind: input, shape index: {}]   ;;  %s1949_s2 = inlined_call_operand.vmem [shape: f32[2,1,16], index: 2, kind: input, shape index: {}]   ;;  %s1950_s3 = inlined_call_operand.vmem [shape: f32[2,16,32], index: 3, kind: input, shape index: {}]   ;;  %s1951_s4 = inlined_call_operand.vmem [shape: f32[128,64], index: 4, kind: input, shape index: {}]   ;;  %s1952_s5 = inlined_call_operand.vmem [shape: f32[1,64], index: 5, kind: input, shape index: {}]   ;;  %s1953_s6 = inlined_call_operand.vmem [shape: f32[64,64], index: 6, kind: input, shape index: {}]   ;;  %s1954_s7 = inlined_call_operand.vmem [shape: f32[1,64], index: 7, kind: input, shape index: {}]   ;;  %s1955_s8 = inlined_call_operand.hbm [shape: f32[2,16,64], index: 8, kind: output, shape index: {}]  }
   0x1   :  { %15 = vsyncpa [#allocation3 + $0x1], 0  ;;  %s1718_s27 = smov 0   ;;  %s1720_s28 = smov 0  }
   0x2   :  { %s1722_s29 = smov 0   ;;  %s1724_s30 = smov 0  }
   0x3 LB: > { %s1739_s9 = sadd.s32 4294967295, %s1665_s30   ;;  %s1302_s10 = sadd.s32 4294967294, %s1665_s30   ;;  %s1665_s30 = sphi %s1724_s30, %s1961_s30   ;;  %s1661_s29 = sphi %s1722_s29, %s1960_s29   ;;  %s1657_s28 = sphi %s1720_s28, %s1959_s28   ;;  %s1653_s27 = sphi %s1718_s27, %s1958_s27  }
   0x4   : > { %s1743_s11 = sadd.s32 1, %s1665_s30   ;;  %s216_s12 = sadd.s32 1, %s1661_s29 }
   0x5   : > { %s213_s13 = ssub.s32 %s1665_s30, %s1743_s11  ;;  %p226_p0 = scmp.ne.s32.totalorder %s1661_s29, %s1657_s28 }
   0x6   : > { %p214_p1 = scmp.eq.s32.totalorder %s213_s13, 0  ;;  %p227_p2 = scmp.eq.s32.totalorder %s1739_s9, 1 }
   0x7   : > { %p232_p3 = scmp.ne.s32.totalorder %s1657_s28, %s1653_s27  ;;  %p233_p4 = scmp.eq.s32.totalorder %s1302_s10, 1 }
   0x8   : > { %s1754_s14 = scalar_select %p214_p1, %s1661_s29, %s216_s12  }
   0x9   : > { %p1756_p5 = por %p227_p2, %p226_p0  ;;  %p1760_p6 = por %p233_p4, %p232_p3 }
   0xa   : > { %p1305_p7 = scmp.ge.s32.totalorder %s1665_s30, 1  ;;  %p293_p8 = scmp.lt.s32.totalorder %s1665_s30, 3 }
   0xc   : > { %p294_p9 = pnand %p1305_p7, %p293_p8 }
   0xd   : > { %p340_p10 = scmp.lt.s32.totalorder (!%p294_p9), %s1739_s9, 1  ;;  %v1667_v0 = vmov (!%p294_p9), 0   ;;  %vm414_vm0 = vcmask (!%p294_p9), 130048   ;;  %v1668_v6 = vmov (!%p294_p9), 1.0   ;;  %v402_v7 = vld [vmem:[%s1951_s4 + $0x20] sm:$0xff] (!%p294_p9)  ;;  %v403_v8 = vld [vmem:[%s1951_s4 + $0x28] sm:$0xff] (!%p294_p9)  ;;  %v360_v13 = vlaneseq (!%p294_p9) }
   0xe   : > { %297 = sbr.rel (%p294_p9) target bundleno = 846 (0x34e), region = 52  ;;  %1602 = vset.pattern.permute.xlu0 (!%p294_p9), %v1667_v0  ;;  %1401 = vmatprep.mubr.msk.f32.mxu1 (!%p294_p9), %vm414_vm0, %v1668_v6  ;;  %v1496_v9 = vpack.c.bf16 (!%p294_p9), %v403_v8, %v402_v7  ;;  %v404_v10 = vld [vmem:[%s1951_s4 + $0x30] sm:$0xff] (!%p294_p9)  ;;  %v405_v11 = vld [vmem:[%s1951_s4 + $0x38] sm:$0xff] (!%p294_p9)  ;;  %v1669_v17 = vmov (!%p294_p9), 0.0   ;;  %v398_v51 = vld [vmem:[%s1951_s4] sm:$0xff] (!%p294_p9)  ;;  %vm574_vm3 = vcmask (!%p294_p9), 261120  }
   0xf   : > { %v1500_v12 = vpack.c.bf16 (!%p294_p9), %v405_v11, %v404_v10  ;;  %v361_v14 = vshrl.u32 (!%p294_p9), %v360_v13, 7  ;;  %v364_v15 = vand.u32 (!%p294_p9), 127, %v360_v13  ;;  %v399_v52 = vld [vmem:[%s1951_s4 + $0x8] sm:$0xff] (!%p294_p9)  ;;  %v1094_v54 = vld [vmem:[%s1953_s6] sm:$0xff] (!%p294_p9)  ;;  %v1096_v56 = vld [vmem:[%s1953_s6 + $0x10] sm:$0xff] (!%p294_p9)  ;;  %vm1109_vm4 = vcmask (!%p294_p9), 523264  }
  0x10   : > { %1497 = vmatprep.subr.bf16.mxu0 (!%p294_p9), %v1496_v9  ;;  %v1504_v53 = vpack.c.bf16 (!%p294_p9), %v399_v52, %v398_v51  ;;  %v1095_v55 = vld [vmem:[%s1953_s6 + $0x8] sm:$0xff] (!%p294_p9)  ;;  %v1097_v58 = vld [vmem:[%s1953_s6 + $0x18] sm:$0xff] (!%p294_p9)  ;;  %v1098_v60 = vld [vmem:[%s1953_s6 + $0x20] sm:$0xff] (!%p294_p9)  ;;  %s337_s13 = sand.u32 (!%p294_p9), 1, %s1657_s28  }
  0x11   : > { %1499 = vmatpush3.bf16.msra.mxu0 (!%p294_p9), %v1496_v9  ;;  %vm365_vm1 = vcmp.eq.s32.totalorder (!%p294_p9), %v361_v14, %v364_v15  ;;  %v362_v16 = vadd.s32 (!%p294_p9), 8, %v361_v14  ;;  %v1536_v57 = vpack.c.bf16 (!%p294_p9), %v1095_v55, %v1094_v54  ;;  %v1540_v59 = vpack.c.bf16 (!%p294_p9), %v1097_v58, %v1096_v56  ;;  %v1099_v61 = vld [vmem:[%s1953_s6 + $0x28] sm:$0xff] (!%p294_p9)  ;;  %v400_v63 = vld [vmem:[%s1951_s4 + $0x10] sm:$0xff] (!%p294_p9)  ;;  %v401_v0 = vld [vmem:[%s1951_s4 + $0x18] sm:$0xff] (!%p294_p9)  ;;  %s1306_s19 = sshll.u32 (!%p294_p9), %s337_s13, 4 }
  0x12   : > { %1501 = vmatprep.subr.bf16.mxu0 (!%p294_p9), %v1500_v12  ;;  %v1313_v18 = vsel (!%p294_p9), %vm365_vm1, 1.0, %v1669_v17  ;;  %v1544_v62 = vpack.c.bf16 (!%p294_p9), %v1099_v61, %v1098_v60  ;;  %v408_v7 = vld [vmem:[%s1951_s4 + $0x50] sm:$0xff] (!%p294_p9)  ;;  %v409_v8 = vld [vmem:[%s1951_s4 + $0x58] sm:$0xff] (!%p294_p9)  ;;  %v411_v13 = vld [vmem:[%s1951_s4 + $0x68] sm:$0xff] (!%p294_p9)  ;;  %s339_s22 = scalar_lea.vmem (!%p294_p9), [#allocation2], %s1306_s19 }
  0x13   : > { %vm366_vm2 = vcmp.eq.s32.totalorder (!%p294_p9), %v362_v16, %v364_v15  ;;  %v1520_v11 = vpack.c.bf16 (!%p294_p9), %v409_v8, %v408_v7  ;;  %v412_v16 = vld [vmem:[%s1951_s4 + $0x70] sm:$0xff] (!%p294_p9)  ;;  %s1207_s23 = sshll.u32 (!%p294_p9), %s339_s22, 4  ;;  %s1897_s23 = int_to_ptr.vmem [resolvable:$true] %s1207_s23 }
  0x14   : > { %v1314_v21 = vsel (!%p294_p9), %vm366_vm2, 1.0, %v1669_v17  ;;  %v413_v17 = vld [vmem:[%s1951_s4 + $0x78] sm:$0xff] (!%p294_p9) }
  0x15   : > { %s1768_s17 = scalar_select %p340_p10, %s1739_s9, 1  ;;  %1503 = vmatpush3.bf16.msra.mxu0 %v1500_v12  ;;  %v410_v12 = vld [vmem:[%s1951_s4 + $0x60] sm:$0xff] }
  0x16   : > { %1505 = vmatprep.subr.bf16.mxu0 %v1504_v53  ;;  %v1528_v14 = vpack.c.bf16 %v411_v13, %v410_v12 }
  0x17   : > { %s1771_s18 = sshll.u32 %s1768_s17, 4  ;;  %s352_s10 = scalar_lea.vmem %s1949_s2, %s1768_s17 }
  0x18   : > { %s349_s21 = scalar_lea.vmem %s1948_s1, %s1771_s18  ;;  %s357_s24 = scalar_lea.vmem %s1950_s3, %s1771_s18  ;;  %v1315_v23 = vld [vmem:[%s352_s10] ss:$0 sm:$0xff] }
  0x19   : > { %v373_v1 = vld [vmem:[%s349_s21] sm:$0xff]  ;;  %v397_v3 = vld [vmem:[%s357_s24 + $0x8] sm:$0xff]  ;;  %s1906_s17 = scalar_lea.sflag [#allocation3], %s337_s13 }
  0x1a   : > { %v396_v2 = vld [vmem:[%s357_s24] sm:$0xff]  ;;  %377 = vperm.xlu0 %1602, %v373_v1   ;;  %v374_v5 = vld [vmem:[%s349_s21 + $0x8] sm:$0xff]  ;;  %s344_s24 = scalar_lea.vmem %s1947_s0, %s1771_s18  ;;  %s1670_s18 = smov [#allocation2]  }
  0x1b   : > { %v1781_v4 = vpack.c.bf16 %v397_v3, %v396_v2  ;;  %v358_v19 = vld [vmem:[%s344_s24] sm:$0xff]  ;;  %v359_v22 = vld [vmem:[%s344_s24 + $0x8] sm:$0xff]  ;;  %v1508_v3 = vpack.c.bf16 %v401_v0, %v400_v63  ;;  %s1346_s24 = sshll.u32 %s1739_s9, 8  ;;  %s1603_s9 = scalar_lea.vmem %s1897_s23, 256 }
  0x1c   : > { %v371_v20 = vadd.f32 %v1313_v18, %v358_v19  ;;  %v372_v26 = vadd.f32 %v1314_v21, %v359_v22  ;;  %v1532_v19 = vpack.c.bf16 %v413_v17, %v412_v16  ;;  %v1101_v21 = vld [vmem:[%s1953_s6 + $0x38] sm:$0xff]  ;;  %s1902_s10 = scalar_lea.hbm %s1955_s8, %s1346_s24  ;;  %p1604_p11 = scmp.ne.s32.totalorder %s1897_s23, %s1603_s9 }
  0x1d   : > { %1489 = vmatprep.subr.bf16.mxu1 %v1781_v4  ;;  %s1607_s12 = sshll.u32 %s1670_s18, 4  ;;  %s1608_s12 = int_to_ptr.vmem [resolvable:$false] %s1607_s12 }
  0x1e   : > { %1491 = vmatpush3.bf16.msra.mxu1 %v1781_v4  ;;  %382 = vperm.xlu0 %1602, %v374_v5   ;;  %v407_v5 = vld [vmem:[%s1951_s4 + $0x48] sm:$0xff]  ;;  %p1605_p12 = pnand %p1604_p11, %p1756_p5  ;;  %s1609_s19 = scalar_lea.vmem %s1608_s12, 512 }
  0x1f   : > { %1493 = vmatprep.subr.bf16.mxu1 %v1781_v4  ;;  %p1610_p0 = scmp.lt.s32.totalorder %s1897_s23, %s1608_s12  ;;  %p1611_p1 = scmp.lt.s32.totalorder %s1609_s19, %s1603_s9 }
  0x20   : > { %p1606_p13 = pneg %p1605_p12 }
  0x21   : > { %1402 = vmatmul.mubr.msk.f32.vlgmr.msra.gmra.mrb[0].mxu1 %vm414_vm0, %v1668_v6  ;;  %p1612_p2 = por %p1611_p1, %p1610_p0 }
  0x22   : > { %1495 = vmatpush3.bf16.msra.mxu1 %v1781_v4 }
  0x23   : > { %1513 = vmatprep.subr.bf16.mxu1 %v1781_v4  ;;  %p1613_p3 = pnand %p1612_p2, %p1606_p13 }
  0x99   : > { %v378_v24 = vpop.permute.xlu0 %377 }
  0x9a   : > { %v385_v25 = vmul.f32 %v378_v24, %v371_v20  ;;  %v1100_v20 = vld [vmem:[%s1953_s6 + $0x30] sm:$0xff] }
  0x9b   : > { %v1548_v22 = vpack.c.bf16 %v1101_v21, %v1100_v20 }
  0x9c   : > { %v394_v27 = vmul.f32 %v1315_v23, %v385_v25 }
  0x9d   : > { %v383_v28 = vpop.permute.xlu0 %382 }
  0x9e   : > { %v386_v29 = vmul.f32 %v383_v28, %v372_v26  ;;  %1408 = vmatprep.mubr.msk.f32.mxu1 %vm414_vm0, %v394_v27  ;;  %v737_v30 = vmul.f32 3.0, %v394_v27  ;;  %v910_v36 = vmul.f32 5.0, %v394_v27  ;;  %v914_v40 = vmul.f32 2.0, %v394_v27  ;;  %v1335_v28 = vld [vmem:[%s1954_s7] ss:$0 sm:$0xff] }
  0xa0   : > { %v395_v31 = vmul.f32 %v1315_v23, %v386_v29  ;;  %v739_v32 = vmul.f32 %v737_v30, %v394_v27  ;;  %v1334_v23 = vld [vmem:[%s1952_s5] ss:$0 sm:$0xff] }
  0xa2   : > { %1409 = vmatmul.mubr.msk.f32.vlgmr.msra.gmra.mrb[2].mxu1 %vm414_vm0, %v395_v31  ;;  %v1324_v33 = vadd.f32 -1.0, %v739_v32  ;;  %v738_v34 = vmul.f32 3.0, %v395_v31  ;;  %v911_v41 = vmul.f32 5.0, %v395_v31  ;;  %v915_v46 = vmul.f32 2.0, %v395_v31 }
  0xa3   : > { %1515 = vmatpush3.bf16.msra.mxu1 %v1781_v4 }
  0xa4   : > { %v744_v35 = vmul.f32 0.5, %v1324_v33  ;;  %v740_v37 = vmul.f32 %v738_v34, %v395_v31  ;;  %1525 = vmatprep.subr.bf16.mxu1 %v1781_v4 }
  0xa6   : > { %1437 = vmatprep.mubr.msk.f32.mxu1 %vm414_vm0, %v744_v35  ;;  %v912_v38 = vmul.f32 %v910_v36, %v744_v35  ;;  %v1325_v39 = vadd.f32 -1.0, %v740_v37 }
  0xa8   : > { %v745_v42 = vmul.f32 0.5, %v1325_v39  ;;  %v916_v43 = vsub.f32 %v912_v38, %v914_v40 }
  0xaa   : > { %1438 = vmatmul.mubr.msk.f32.vlgmr.msra.gmra.mrb[4].mxu1 %vm414_vm0, %v745_v42  ;;  %v913_v44 = vmul.f32 %v911_v41, %v745_v42  ;;  %v919_v45 = vmul.f32 0.33333334, %v916_v43 }
  0xab   : > { %1527 = vmatpush3.bf16.msra.mxu1 %v1781_v4  ;;  %v406_v4 = vld [vmem:[%s1951_s4 + $0x40] sm:$0xff] }
  0xac   : > { %1455 = vmatprep.mubr.msk.f32.mxu1 %vm414_vm0, %v919_v45  ;;  %v917_v47 = vsub.f32 %v913_v44, %v915_v46  ;;  %1537 = vmatprep.subr.bf16.mxu1 %v1536_v57  ;;  %v1516_v6 = vpack.c.bf16 %v407_v5, %v406_v4 }
  0xae   : > { %v920_v48 = vmul.f32 0.33333334, %v917_v47 }
  0xb0   : > { %1456 = vmatmul.mubr.msk.f32.vlgmr.msra.gmra.mrb[6].mxu1 %vm414_vm0, %v920_v48 }
  0xb1   : > { %1539 = vmatpush3.bf16.msra.mxu1 %v1536_v57 }
  0xb2   : > { %1541 = vmatprep.subr.bf16.mxu1 %v1540_v59 }
  0xb5   : > { %1543 = vmatpush3.bf16.msra.mxu1 %v1540_v59 }
  0xb6   : > { %1545 = vmatprep.subr.bf16.mxu1 %v1544_v62 }
  0xb9   : > { %1547 = vmatpush3.bf16.msra.mxu1 %v1544_v62 }
  0xba   : > { %1549 = vmatprep.subr.bf16.mxu1 %v1548_v22 }
  0xbd   : > { %1551 = vmatpush3.bf16.msra.mxu1 %v1548_v22 }
  0xf4   : > { %v1403_v49 = vpop.f32.mrb[0].mxu1 }
  0xf5   : > { %v484_v50 = vpop.f32.mrb[1].mxu1 }
 0x175   : > { %v1410_v1 = vpop.f32.mrb[2].mxu1 }
 0x176   : > { %v565_v2 = vpop.f32.mrb[3].mxu1 }
 0x177   : > { %1419 = vmatprep.mubr.msk.f32.mxu0 %vm574_vm3, %v565_v2 }
 0x178   : > { %1420 = vmatmul.mubr.msk.f32.vlgmr.msra.gmra.mrb[0].mxu0 %vm574_vm3, %v1410_v1 }
 0x179   : > { %1507 = vmatpush3.bf16.msra.mxu0 %v1504_v53  ;;  %1430 = vmatprep.mubr.msk.f32.mxu0 %vm574_vm3, %v484_v50 }
 0x17a   : > { %1509 = vmatprep.subr.bf16.mxu0 %v1508_v3 }
 0x17d   : > { %1511 = vmatpush3.bf16.msra.mxu0 %v1508_v3  ;;  %v1439_v9 = vpop.f32.mrb[4].mxu1 }
 0x17e   : > { %v818_v10 = vpop.f32.mrb[5].mxu1  ;;  %1517 = vmatprep.subr.bf16.mxu0 %v1516_v6 }
 0x180   : > { %1431 = vmatmul.mubr.msk.f32.vlgmr.msra.gmra.mrb[0].mxu0 %vm574_vm3, %v1403_v49 }
 0x181   : > { %1519 = vmatpush3.bf16.msra.mxu0 %v1516_v6  ;;  %1448 = vmatprep.mubr.msk.f32.mxu0 %vm574_vm3, %v818_v10 }
 0x182   : > { %1521 = vmatprep.subr.bf16.mxu0 %v1520_v11 }
 0x183   : > { %v1457_v15 = vpop.f32.mrb[6].mxu1 }
 0x184   : > { %v993_v18 = vpop.f32.mrb[7].mxu1 }
 0x185   : > { %1523 = vmatpush3.bf16.msra.mxu0 %v1520_v11 }
 0x186   : > { %1529 = vmatprep.subr.bf16.mxu0 %v1528_v14 }
 0x188   : > { %1449 = vmatmul.mubr.msk.f32.vlgmr.msra.gmra.mrb[0].mxu0 %vm574_vm3, %v1439_v9 }
 0x189   : > { %1531 = vmatpush3.bf16.msra.mxu0 %v1528_v14  ;;  %1466 = vmatprep.mubr.msk.f32.mxu0 %vm574_vm3, %v993_v18 }
 0x18a   : > { %1533 = vmatprep.subr.bf16.mxu0 %v1532_v19 }
 0x18d   : > { %1535 = vmatpush3.bf16.msra.mxu0 %v1532_v19 }
 0x190   : > { %1467 = vmatmul.mubr.msk.f32.vlgmr.msra.gmra.mrb[0].mxu0 %vm574_vm3, %v1457_v15 }
 0x263   : > { %v1468_v24 = vpop.f32.mrb[0].mxu0 }
 0x264   : > { %v1074_v25 = vpop.f32.mrb[1].mxu0  ;;  %v1093_v27 = vadd.f32 %v1468_v24, %v1334_v23 }
 0x265   : > { %v1092_v26 = vadd.f32 %v1334_v23, %v1074_v25 }
 0x267   : > { %1485 = vmatprep.mubr.msk.f32.mxu1 %vm1109_vm4, %v1092_v26 }
 0x268   : > { %1486 = vmatmul.mubr.msk.f32.vlgmr.msra.gmra.mrb[8].mxu1 %vm1109_vm4, %v1093_v27 }
 0x33b   : > { %v1487_v29 = vpop.f32.mrb[8].mxu1 }
 0x33c   : > { %v1188_v30 = vadd.f32 %v1487_v29, %v1335_v28  ;;  %v1182_v31 = vpop.f32.mrb[9].mxu1 }
 0x33d   : > { %v1183_v32 = vadd.f32 %v1335_v28, %v1182_v31 }
 0x33e   : > { %1192 = vst.msk [vmem:[%s339_s22 + $0x8] sm:$0xff] %vm1109_vm4, %v1188_v30 }
 0x33f   : > { %1191 = vst.msk [vmem:[%s339_s22] sm:$0xff] %vm1109_vm4, %v1183_v32 }
 0x340   : > { %1616 = shalt.err (!%p1613_p3)
}
 0x341   : > { %s1617_s13 = scalar_lea.hbm %s1902_s10, 256  ;;  %s1621_s22 = scalar_lea.hbm %s1955_s8, 512 }
 0x342   : > { %p1618_p4 = scmp.ne.s32.totalorder %s1902_s10, %s1617_s13  ;;  %p1622_p9 = scmp.lt.u32.totalorder %s1902_s10, %s1955_s8 }
 0x343   : > { %p1623_p10 = scmp.lt.u32.totalorder %s1621_s22, %s1617_s13  ;;  %p1625_p12 = scmp.lt.u32.totalorder %s1617_s13, %s1902_s10 }
 0x344   : > { %p1619_p7 = pnand %p1618_p4, %p1756_p5 }
 0x345   : > { %p1624_p11 = por %p1623_p10, %p1622_p9 }
 0x346   : > { %p1620_p8 = pneg %p1619_p7 }
 0x347   : > { %p1626_p13 = por %p1625_p12, %p1624_p11 }
 0x349   : > { %p1627_p0 = pnand %p1626_p13, %p1620_p8 }
 0x34b   : > { %1630 = shalt.err (!%p1627_p0)
}
 0x34c   : > { %s1671_s26 = smov 128   ;;  %s1672_s9 = smov 8  }
 0x34d   : > { %1558 = dma.vmem_to_hbm [thread:$0]  (%p1756_p5), %s1897_s23, 256, %s1902_s10, %s1906_s17, %s1671_s26, %s1671_s26, %s1672_s9  }
 0x34e PF: > { %p1564_p1 = scmp.ge.s32.totalorder %s1665_s30, 2  ;;  %s1222_s18 = sand.u32 1, %s1653_s27  }
 0x34f   : > { %s1223_s12 = scalar_lea.sflag [#allocation3], %s1222_s18 }
 0x350   : > { %p1561_p2 = pnand %p1564_p1, %p1760_p6 }
 0x352   : > { %1648 = dma.done.wait (!%p1561_p2), %s1223_s12, 256  }
 0x353   : > { %1650 = vsyncadd (!%p1561_p2), %s1223_s12, 4294967040  ;;  %p18_p3 = scmp.ge.s32.totalorder %s1743_s11, 4   ;;  %s1958_s27 = smov %s1657_s28 }
 0x354   : > { %s1959_s28 = smov %s1661_s29  ;;  %s1960_s29 = smov %s1754_s14 }
 0x355   : > { %s1961_s30 = smov %s1743_s11  ;;  %20 = sbr.rel (!%p18_p3) target bundleno = 3 (0x3), region = 96 }
 0x35c   :  { %1228 = vsyncpa [#allocation3], 1 }
 0x35d   :  { %1230 = vsyncpa [#allocation3 + $0x1], 1 }

</bundles_post_ra>
